<compile_context>
chip_gen: v7x
topology: tpu7x:2x2x1
jax: 0.10.0
libtpu: 0.0.40
codegen_flags: <defaults>
</compile_context>

<pallas_src>
import functools

import jax
import jax.numpy as jnp
from jax.experimental import pallas as pl
from jax.experimental.pallas import tpu as pltpu


def _tensorcores_per_jax_device():
    """Best-effort TensorCores-per-JAX-device (perf-only heuristic).

    2 on megacore chips (v4/v5p) and v7x, 1 on single-core chips (v5e/v6e).
    Wrong detection only costs a grid step / an idle core, never correctness.
    """
    try:
        kind = jax.devices()[0].device_kind.lower()
    except Exception:
        return 1
    if "lite" in kind or "v5e" in kind or "v6e" in kind:
        return 1
    if "v7" in kind or "v5p" in kind or "v5" in kind or "v4" in kind:
        return 2
    return 1


def gcn_fused_kernel(*refs, layer_cfg, nb, n):
    """Fused multi-layer GCN forward for a block of `nb` batch elements.

    refs = (x_ref, adj_ref, wt0_ref, b0_ref, wt1_ref, b1_ref, ..., o_ref)
      x_ref:   (nb, N, F0)       adj_ref: (nb, N, N)
      wtl_ref: (F_{l-1}, F_l)    bl_ref:  (1, F_l)
      o_ref:   (nb, N, F_last)
    layer_cfg: static tuple of (apply_relu, linear_first) per layer.
    """
    x_ref, adj_ref = refs[0], refs[1]
    o_ref = refs[-1]
    nl = len(layer_cfg)
    wt_refs = refs[2:2 + 2 * nl:2]
    b_refs = refs[3:3 + 2 * nl:2]

    # Per-batch adjacency tiles: loaded once per forward, reused by every
    # layer (never re-DMA'd per layer; hidden h never leaves VMEM).
    adjs = [adj_ref[bi] for bi in range(nb)]                  # nb x (N, N)

    # Degree of (A + I) is rowsum(A) + 1  =>  deg >= 1 for 0/1 adjacency,
    # so the reference's isinf guard is dead code.  Flattened over batch.
    d = jnp.concatenate(
        [jax.lax.rsqrt(jnp.sum(a, axis=1, keepdims=True) + 1.0) for a in adjs],
        axis=0)                                               # (nb*N, 1)
    # TODO(synk): at large N compute the rowsum on the MXU (adj @ ones) or
    # fold it into the first aggregate instead of an XLU lane-reduce.

    def aggregate(h):
        # d * (A @ (d*h) + d*h)  ==  D^-1/2 (A + I) D^-1/2 @ h   (per batch)
        hs = d * h                                            # (nb*N, F)
        agg = jnp.concatenate(
            [jnp.dot(adjs[bi], hs[bi * n:(bi + 1) * n, :],
                     preferred_element_type=jnp.float32)
             for bi in range(nb)],
            axis=0)                                           # (nb*N, F)
        return d * (agg + hs)

    # Flatten batch into the node (sublane) dim: linear / bias / relu then run
    # on ONE (nb*N, F) slab instead of nb small tiles.
    h = x_ref[...].reshape(nb * n, -1)                        # (nb*N, F0)
    for li, (apply_relu, linear_first) in enumerate(layer_cfg):
        wt = wt_refs[li][...]                                 # (Fin, Fout)
        b = b_refs[li][...]                                   # (1, Fout)
        if linear_first:
            # agg(h) @ Wt == agg(h @ Wt): contract the N^2 matmul over the
            # smaller feature dim (bias added after -> math unchanged).
            h = jnp.dot(h, wt, preferred_element_type=jnp.float32)
            h = aggregate(h)
        else:
            h = aggregate(h)
            h = jnp.dot(h, wt, preferred_element_type=jnp.float32)
        h = h + b
        # dropout: identity (eval mode)
        # TODO(synk): training-mode dropout (p > 0) not implemented.
        if apply_relu:
            h = jnp.maximum(h, 0.0)

    # Single sublane-dense store of the whole output block.
    o_ref[...] = h.reshape(nb, n, -1).astype(o_ref.dtype)


def gcn_forward(params, x, adj, *, batch_grid=None):
    """Full GCN forward in ONE pallas_call (all layers and all batches fused).

    params: list of (w, b, apply_relu) with w: (Fout, Fin) like nn.Linear.weight.
    batch_grid: number of batch blocks along the (only) grid axis.
      None = auto: 1 on single-TC chips (whole forward in one grid step),
      2 on 2-TC chips so each TensorCore takes half the batch.
    """
    B, N, fin0 = x.shape
    if batch_grid is None:
        c = _tensorcores_per_jax_device()
        batch_grid = c if (c > 1 and B % c == 0) else 1
    assert B % batch_grid == 0, (B, batch_grid)
    bb = B // batch_grid

    inputs = [x.astype(jnp.float32), adj.astype(jnp.float32)]
    in_specs = [
        pl.BlockSpec((bb, N, fin0), lambda i: (i, 0, 0)),
        pl.BlockSpec((bb, N, N), lambda i: (i, 0, 0)),
    ]

    layer_cfg = []
    f_prev = fin0
    for (w, b, apply_relu) in params:
        fout, fin = w.shape
        assert fin == f_prev, (fin, f_prev)
        inputs += [jnp.transpose(w).astype(jnp.float32),      # (Fin, Fout)
                   b.reshape(1, fout).astype(jnp.float32)]    # (1, Fout)
        in_specs += [
            pl.BlockSpec((fin, fout), lambda i: (0, 0)),
            pl.BlockSpec((1, fout), lambda i: (0, 0)),
        ]
        layer_cfg.append((bool(apply_relu), fout < fin))
        f_prev = fout

    kernel = functools.partial(gcn_fused_kernel,
                               layer_cfg=tuple(layer_cfg), nb=bb, n=N)
    return pl.pallas_call(
        kernel,
        out_shape=jax.ShapeDtypeStruct((B, N, f_prev), jnp.float32),
        grid=(batch_grid,),
        in_specs=in_specs,
        out_specs=pl.BlockSpec((bb, N, f_prev), lambda i: (i, 0, 0)),
        # "parallel" shards the grid axis across TensorCores on 2-TC chips
        # (v4/v5p megacore, v7x); with batch_grid=1 it is a no-op.
        compiler_params=pltpu.CompilerParams(
            dimension_semantics=("parallel",)),
    )(*inputs)


def init_gcn_params(key, in_features, hidden_features, out_features, num_layers=2):
    """Deterministic parameter init (shapes match the PyTorch module)."""
    dims = [in_features] + [hidden_features] * (num_layers - 1) + [out_features]
    params = []
    for li in range(num_layers):
        fin, fout = dims[li], dims[li + 1]
        key, kw, kb = jax.random.split(key, 3)
        bound = 1.0 / jnp.sqrt(jnp.float32(fin))
        w = jax.random.uniform(kw, (fout, fin), jnp.float32, -bound, bound)
        b = jax.random.uniform(kb, (fout,), jnp.float32, -bound, bound)
        apply_relu = li < num_layers - 1                      # last layer: no ReLU
        params.append((w, b, apply_relu))
    return params


def gcn_reference(params, x, adj):
    """Pure-JAX reference mirroring the PyTorch forward (f32 throughout)."""
    B, N, _ = x.shape
    out = x
    for (w, b, apply_relu) in params:
        a_hat = adj + jnp.eye(N, dtype=adj.dtype)[None]
        deg = jnp.sum(a_hat, axis=2)
        dd = jnp.power(deg, -0.5)
        dd = jnp.where(jnp.isinf(dd), 0.0, dd)
        norm_adj = dd[:, :, None] * a_hat * dd[:, None, :]
        agg = jnp.einsum('bij,bjf->bif', norm_adj, out)
        lin = agg @ w.T + b
        out = jnp.maximum(lin, 0.0) if apply_relu else lin
    return out


if __name__ == "__main__":
    B, N = 2, 16                       # batch, num_nodes
    in_features, hidden_features, out_features = 8, 32, 4
    num_layers = 2

    key = jax.random.PRNGKey(0)
    k_x, k_adj, k_p = jax.random.split(key, 3)

    x = jax.random.normal(k_x, (B, N, in_features), dtype=jnp.float32)
    # random 0/1 adjacency (no self loops required; layer adds I)
    adj = (jax.random.uniform(k_adj, (B, N, N)) > 0.6).astype(jnp.float32)

    params = init_gcn_params(k_p, in_features, hidden_features, out_features,
                             num_layers=num_layers)

    ref = gcn_reference(params, x, adj)

    out = jax.block_until_ready(gcn_forward(params, x, adj))
    assert out.shape == (B, N, out_features), out.shape
    assert jnp.allclose(out, ref, atol=1e-3, rtol=1e-3), \
        float(jnp.max(jnp.abs(out - ref)))

    print("KERNEL_OK")
</pallas_src>

<mosaic_0001>
module attributes {stable_mosaic.version = 11 : i64} {
  func.func @gcn_fused_kernel(%arg0: i32, %arg1: memref<2x16x8xf32, #tpu.memory_space<vmem>>, %arg2: memref<2x16x16xf32, #tpu.memory_space<vmem>>, %arg3: memref<8x32xf32, #tpu.memory_space<vmem>>, %arg4: memref<1x32xf32, #tpu.memory_space<vmem>>, %arg5: memref<32x4xf32, #tpu.memory_space<vmem>>, %arg6: memref<1x4xf32, #tpu.memory_space<vmem>>, %arg7: memref<2x16x4xf32, #tpu.memory_space<vmem>>) attributes {dimension_semantics = [#tpu.dimension_semantics<parallel>], iteration_bounds = array<i64: 1>, scalar_prefetch = 0 : i64, scratch_operands = 0 : i64, tpu.core_type = #tpu.core_type<tc>, window_params = [{transform_indices = @transform_0, window_bounds = array<i64: 2, 16, 8>}, {transform_indices = @transform_1, window_bounds = array<i64: 2, 16, 16>}, {pipeline_mode = #tpu.pipeline_mode<synchronous>, transform_indices = @transform_2, window_bounds = array<i64: 8, 32>}, {pipeline_mode = #tpu.pipeline_mode<synchronous>, transform_indices = @transform_3, window_bounds = array<i64: 1, 32>}, {pipeline_mode = #tpu.pipeline_mode<synchronous>, transform_indices = @transform_4, window_bounds = array<i64: 32, 4>}, {pipeline_mode = #tpu.pipeline_mode<synchronous>, transform_indices = @transform_5, window_bounds = array<i64: 1, 4>}, {transform_indices = @transform_6, window_bounds = array<i64: 2, 16, 4>}]} {
    %c0 = arith.constant 0 : index
    %c0_0 = arith.constant 0 : index
    %c0_1 = arith.constant 0 : index
    %0 = vector.load %arg2[%c0, %c0_0, %c0_1] : memref<2x16x16xf32, #tpu.memory_space<vmem>>, vector<1x16x16xf32>
    %1 = vector.shape_cast %0 : vector<1x16x16xf32> to vector<16x16xf32>
    %c1 = arith.constant 1 : index
    %c0_2 = arith.constant 0 : index
    %c0_3 = arith.constant 0 : index
    %2 = vector.load %arg2[%c1, %c0_2, %c0_3] : memref<2x16x16xf32, #tpu.memory_space<vmem>>, vector<1x16x16xf32>
    %3 = vector.shape_cast %2 : vector<1x16x16xf32> to vector<16x16xf32>
    %cst = arith.constant dense<0.000000e+00> : vector<16xf32>
    %4 = vector.multi_reduction <add>, %1, %cst [1] : vector<16x16xf32> to vector<16xf32>
    %5 = vector.shape_cast %4 : vector<16xf32> to vector<16x1xf32>
    %cst_4 = arith.constant 1.000000e+00 : f32
    %6 = vector.broadcast %cst_4 : f32 to vector<16x1xf32>
    %7 = arith.addf %5, %6 : vector<16x1xf32>
    %8 = math.rsqrt %7 : vector<16x1xf32>
    %cst_5 = arith.constant dense<0.000000e+00> : vector<16xf32>
    %9 = vector.multi_reduction <add>, %3, %cst_5 [1] : vector<16x16xf32> to vector<16xf32>
    %10 = vector.shape_cast %9 : vector<16xf32> to vector<16x1xf32>
    %cst_6 = arith.constant 1.000000e+00 : f32
    %11 = vector.broadcast %cst_6 : f32 to vector<16x1xf32>
    %12 = arith.addf %10, %11 : vector<16x1xf32>
    %13 = math.rsqrt %12 : vector<16x1xf32>
    %14 = tpu.concatenate %8, %13 in 0 : vector<16x1xf32>, vector<16x1xf32> -> vector<32x1xf32>
    %c0_7 = arith.constant 0 : index
    %c0_8 = arith.constant 0 : index
    %c0_9 = arith.constant 0 : index
    %15 = vector.load %arg1[%c0_7, %c0_8, %c0_9] : memref<2x16x8xf32, #tpu.memory_space<vmem>>, vector<2x16x8xf32>
    %16 = vector.shape_cast %15 : vector<2x16x8xf32> to vector<32x8xf32>
    %c0_10 = arith.constant 0 : index
    %c0_11 = arith.constant 0 : index
    %17 = vector.load %arg3[%c0_10, %c0_11] : memref<8x32xf32, #tpu.memory_space<vmem>>, vector<8x32xf32>
    %c0_12 = arith.constant 0 : index
    %c0_13 = arith.constant 0 : index
    %18 = vector.load %arg4[%c0_12, %c0_13] : memref<1x32xf32, #tpu.memory_space<vmem>>, vector<1x32xf32>
    %19 = vector.broadcast %14 : vector<32x1xf32> to vector<32x8xf32>
    %20 = arith.mulf %19, %16 : vector<32x8xf32>
    %21 = vector.extract_strided_slice %20 {offsets = [0, 0], sizes = [16, 8], strides = [1, 1]} : vector<32x8xf32> to vector<16x8xf32>
    %cst_14 = arith.constant dense<0.000000e+00> : vector<16x8xf32>
    %22 = tpu.matmul %1, %21, %cst_14 {dimension_numbers = #tpu.dot_dimension_numbers<[1], [0], [0], [1], [0, 0, 1, 1], [], []>} : vector<16x16xf32>, vector<16x8xf32>, vector<16x8xf32> -> vector<16x8xf32>
    %23 = vector.extract_strided_slice %20 {offsets = [16, 0], sizes = [16, 8], strides = [1, 1]} : vector<32x8xf32> to vector<16x8xf32>
    %cst_15 = arith.constant dense<0.000000e+00> : vector<16x8xf32>
    %24 = tpu.matmul %3, %23, %cst_15 {dimension_numbers = #tpu.dot_dimension_numbers<[1], [0], [0], [1], [0, 0, 1, 1], [], []>} : vector<16x16xf32>, vector<16x8xf32>, vector<16x8xf32> -> vector<16x8xf32>
    %25 = tpu.concatenate %22, %24 in 0 : vector<16x8xf32>, vector<16x8xf32> -> vector<32x8xf32>
    %26 = arith.addf %25, %20 : vector<32x8xf32>
    %27 = vector.broadcast %14 : vector<32x1xf32> to vector<32x8xf32>
    %28 = arith.mulf %27, %26 : vector<32x8xf32>
    %cst_16 = arith.constant dense<0.000000e+00> : vector<32x32xf32>
    %29 = tpu.matmul %28, %17, %cst_16 {dimension_numbers = #tpu.dot_dimension_numbers<[1], [0], [0], [1], [0, 0, 1, 1], [], []>} : vector<32x8xf32>, vector<8x32xf32>, vector<32x32xf32> -> vector<32x32xf32>
    %30 = vector.broadcast %18 : vector<1x32xf32> to vector<32x32xf32>
    %31 = arith.addf %29, %30 : vector<32x32xf32>
    %cst_17 = arith.constant 0.000000e+00 : f32
    %32 = vector.broadcast %cst_17 : f32 to vector<32x32xf32>
    %33 = arith.maximumf %31, %32 : vector<32x32xf32>
    %c0_18 = arith.constant 0 : index
    %c0_19 = arith.constant 0 : index
    %34 = vector.load %arg5[%c0_18, %c0_19] : memref<32x4xf32, #tpu.memory_space<vmem>>, vector<32x4xf32>
    %c0_20 = arith.constant 0 : index
    %c0_21 = arith.constant 0 : index
    %35 = vector.load %arg6[%c0_20, %c0_21] : memref<1x4xf32, #tpu.memory_space<vmem>>, vector<1x4xf32>
    %cst_22 = arith.constant dense<0.000000e+00> : vector<32x4xf32>
    %36 = tpu.matmul %33, %34, %cst_22 {dimension_numbers = #tpu.dot_dimension_numbers<[1], [0], [0], [1], [0, 0, 1, 1], [], []>} : vector<32x32xf32>, vector<32x4xf32>, vector<32x4xf32> -> vector<32x4xf32>
    %37 = vector.broadcast %14 : vector<32x1xf32> to vector<32x4xf32>
    %38 = arith.mulf %37, %36 : vector<32x4xf32>
    %39 = vector.extract_strided_slice %38 {offsets = [0, 0], sizes = [16, 4], strides = [1, 1]} : vector<32x4xf32> to vector<16x4xf32>
    %cst_23 = arith.constant dense<0.000000e+00> : vector<16x4xf32>
    %40 = tpu.matmul %1, %39, %cst_23 {dimension_numbers = #tpu.dot_dimension_numbers<[1], [0], [0], [1], [0, 0, 1, 1], [], []>} : vector<16x16xf32>, vector<16x4xf32>, vector<16x4xf32> -> vector<16x4xf32>
    %41 = vector.extract_strided_slice %38 {offsets = [16, 0], sizes = [16, 4], strides = [1, 1]} : vector<32x4xf32> to vector<16x4xf32>
    %cst_24 = arith.constant dense<0.000000e+00> : vector<16x4xf32>
    %42 = tpu.matmul %3, %41, %cst_24 {dimension_numbers = #tpu.dot_dimension_numbers<[1], [0], [0], [1], [0, 0, 1, 1], [], []>} : vector<16x16xf32>, vector<16x4xf32>, vector<16x4xf32> -> vector<16x4xf32>
    %43 = tpu.concatenate %40, %42 in 0 : vector<16x4xf32>, vector<16x4xf32> -> vector<32x4xf32>
    %44 = arith.addf %43, %38 : vector<32x4xf32>
    %45 = vector.broadcast %14 : vector<32x1xf32> to vector<32x4xf32>
    %46 = arith.mulf %45, %44 : vector<32x4xf32>
    %47 = vector.broadcast %35 : vector<1x4xf32> to vector<32x4xf32>
    %48 = arith.addf %46, %47 : vector<32x4xf32>
    %49 = vector.shape_cast %48 : vector<32x4xf32> to vector<2x16x4xf32>
    %c0_25 = arith.constant 0 : index
    %c0_26 = arith.constant 0 : index
    %c0_27 = arith.constant 0 : index
    %50 = vector.load %arg7[%c0_25, %c0_26, %c0_27] : memref<2x16x4xf32, #tpu.memory_space<vmem>>, vector<2x16x4xf32>
    tpu.vector_store %arg7[%c0_25, %c0_26, %c0_27], %49 {strides = array<i32>} : memref<2x16x4xf32, #tpu.memory_space<vmem>>, vector<2x16x4xf32>,
    return
  }
  func.func @transform_0(%arg0: i32) -> (i32, i32, i32) {
    %c0_i32 = arith.constant 0 : i32
    %c0_i32_0 = arith.constant 0 : i32
    %c0_i32_1 = arith.constant 0 : i32
    return %arg0, %c0_i32, %c0_i32_0 : i32, i32, i32
  }
  func.func @transform_1(%arg0: i32) -> (i32, i32, i32) {
    %c0_i32 = arith.constant 0 : i32
    %c0_i32_0 = arith.constant 0 : i32
    %c0_i32_1 = arith.constant 0 : i32
    return %arg0, %c0_i32, %c0_i32_0 : i32, i32, i32
  }
  func.func @transform_2(%arg0: i32) -> (i32, i32) {
    %c0_i32 = arith.constant 0 : i32
    %c0_i32_0 = arith.constant 0 : i32
    %c0_i32_1 = arith.constant 0 : i32
    return %c0_i32, %c0_i32_0 : i32, i32
  }
  func.func @transform_3(%arg0: i32) -> (i32, i32) {
    %c0_i32 = arith.constant 0 : i32
    %c0_i32_0 = arith.constant 0 : i32
    %c0_i32_1 = arith.constant 0 : i32
    return %c0_i32, %c0_i32_0 : i32, i32
  }
  func.func @transform_4(%arg0: i32) -> (i32, i32) {
    %c0_i32 = arith.constant 0 : i32
    %c0_i32_0 = arith.constant 0 : i32
    %c0_i32_1 = arith.constant 0 : i32
    return %c0_i32, %c0_i32_0 : i32, i32
  }
  func.func @transform_5(%arg0: i32) -> (i32, i32) {
    %c0_i32 = arith.constant 0 : i32
    %c0_i32_0 = arith.constant 0 : i32
    %c0_i32_1 = arith.constant 0 : i32
    return %c0_i32, %c0_i32_0 : i32, i32
  }
  func.func @transform_6(%arg0: i32) -> (i32, i32, i32) {
    %c0_i32 = arith.constant 0 : i32
    %c0_i32_0 = arith.constant 0 : i32
    %c0_i32_1 = arith.constant 0 : i32
    return %arg0, %c0_i32, %c0_i32_0 : i32, i32, i32
  }
}

</mosaic_0001>

<bundles_post_ra>
// kernel: tpu_custom_call.1
= control target key start
LH: loop header
LB: loop body
LE: loop exit
PB: predicated region body
PF: predicated region fallthrough
CT: control target
= control target key end

     0   :  { %vm28_vm0 = vcmask 130048   ;;  %v775_v8 = vmov 0   ;;  %vm255_vm1 = vcmask 64512   ;;  %vm362_vm2 = vcmask 261120   ;;  %s924_s1 = inlined_call_operand.vmem [shape: f32[2,16,16], index: 1, kind: input, shape index: {}]   ;;  %s925_s0 = inlined_call_operand.vmem [shape: f32[2,16,8], index: 0, kind: input, shape index: {}]   ;;  %s926_s2 = inlined_call_operand.vmem [shape: f32[8,32], index: 2, kind: input, shape index: {}]   ;;  %s927_s4 = inlined_call_operand.vmem [shape: f32[32,4], index: 4, kind: input, shape index: {}]   ;;  %s928_s3 = inlined_call_operand.vmem [shape: f32[1,32], index: 3, kind: input, shape index: {}]   ;;  %s929_s5 = inlined_call_operand.vmem [shape: f32[1,4], index: 5, kind: input, shape index: {}]   ;;  %s930_s6 = inlined_call_operand.vmem [shape: f32[2,16,4], index: 6, kind: output, shape index: {}]  }
   0x1   :  { %v814_v0 = vld [vmem:[%s924_s1] sm:$0xff]  ;;  %v819_v1 = vld [vmem:[%s924_s1 + $0x8] sm:$0xff]  ;;  %v824_v2 = vld [vmem:[%s924_s1 + $0x10] sm:$0xff]  ;;  %765 = vset.pattern.permute.xlu0 %v775_v8  ;;  %766 = vset.pattern.permute.xlu1 %v775_v8  ;;  %vm632_vm3 = vcmask 31744  }
   0x2   :  { %v29_v3 = vsel %vm28_vm0, %v814_v0, 0.0  ;;  %v39_v4 = vsel %vm28_vm0, %v824_v2, 0.0  ;;  %v833_v5 = vld [vmem:[%s924_s1 + $0x18] sm:$0xff]  ;;  %694 = vmatprep.mubr.msk.f32.mxu0 %vm28_vm0, %v814_v0  ;;  %701 = vmatprep.mubr.msk.f32.mxu1 %vm28_vm0, %v824_v2  ;;  %v32_v6 = vsel %vm28_vm0, %v819_v1, 0.0  ;;  %v49_v22 = vld [vmem:[%s925_s0] sm:$0xff]  ;;  %v50_v23 = vld [vmem:[%s925_s0 + $0x8] sm:$0xff] }
   0x3   :  { %30 = vadd.xlane.f32.xlu0 %v29_v3  ;;  %40 = vadd.xlane.f32.xlu1 %v39_v4  ;;  %v42_v7 = vsel %vm28_vm0, %v833_v5, 0.0  ;;  %v51_v29 = vld [vmem:[%s925_s0 + $0x10] sm:$0xff]  ;;  %v52_v30 = vld [vmem:[%s925_s0 + $0x18] sm:$0xff]  ;;  %v53_v35 = vld [vmem:[%s926_s2] sm:$0xff] }
   0x4   :  { %v357_v36 = vld [vmem:[%s927_s4] sm:$0xff]  ;;  %v358_v37 = vld [vmem:[%s927_s4 + $0x8] sm:$0xff]  ;;  %v359_v51 = vld [vmem:[%s927_s4 + $0x10] sm:$0xff] }
   0x5   :  { %v748_v38 = vpack.c.bf16 %v358_v37, %v357_v36  ;;  %v360_v52 = vld [vmem:[%s927_s4 + $0x18] sm:$0xff]  ;;  %v647_v54 = vld [vmem:[%s928_s3] ss:$0 sm:$0xff] }
   0x6   :  { %v752_v53 = vpack.c.bf16 %v360_v52, %v359_v51 }
   0x7   :  { %33 = vadd.xlane.f32.xlu0 %v32_v6  ;;  %43 = vadd.xlane.f32.xlu1 %v42_v7 }
  0x90   :  { %v31_v9 = vpop.xlane.xlu0 %30  ;;  %v41_v10 = vpop.xlane.xlu1 %40 }
  0x91   :  { %v35_v11 = vadd.f32 1.0, %v31_v9  ;;  %v45_v14 = vadd.f32 1.0, %v41_v10 }
  0x93   :  { %767 = vrsqrt.f32 %v35_v11 }
  0x94   :  { %v34_v12 = vpop.xlane.xlu0 %33  ;;  %v44_v15 = vpop.xlane.xlu1 %43 }
  0x95   :  { %v36_v13 = vadd.f32 1.0, %v34_v12  ;;  %v46_v16 = vadd.f32 1.0, %v44_v15 }
  0x97   :  { %769 = vrsqrt.f32 %v36_v13 }
  0x98   :  { %771 = vrsqrt.f32 %v45_v14 }
  0x99   :  { %773 = vrsqrt.f32 %v46_v16 }
  0x9d   :  { %v768_v17 = vpop.eup %767 }
  0x9e   :  { %57 = vperm.xlu0 %765, %v768_v17  }
  0xa1   :  { %v770_v18 = vpop.eup %769 }
  0xa2   :  { %62 = vperm.xlu1 %766, %v770_v18   ;;  %v772_v19 = vpop.eup %771 }
  0xa3   :  { %v774_v20 = vpop.eup %773 }
  0xa6   :  { %67 = vperm.xlu1 %766, %v772_v19   ;;  %v660_v19 = vld [vmem:[%s929_s5] ss:$0 sm:$0xff] }
  0xaa   :  { %72 = vperm.xlu1 %766, %v774_v20  }
 0x11d   :  { %v843_v21 = vpop.permute.xlu0 %57 }
 0x11e   :  { %v75_v25 = vmul.f32 %v843_v21, %v49_v22 }
 0x121   :  { %v851_v24 = vpop.permute.xlu1 %62 }
 0x122   :  { %v76_v26 = vmul.f32 %v851_v24, %v50_v23 }
 0x124   :  { %v740_v27 = vpack.c.bf16 %v76_v26, %v75_v25 }
 0x125   :  { %v855_v28 = vpop.permute.xlu1 %67 }
 0x126   :  { %741 = vmatprep.subr.bf16.mxu0 %v740_v27  ;;  %v77_v32 = vmul.f32 %v855_v28, %v51_v29 }
 0x127   :  { %743 = vmatpush3.bf16.msra.mxu0 %v740_v27 }
 0x128   :  { %704 = vmatprep.subr.mxu0 %v53_v35 }
 0x129   :  { %v863_v31 = vpop.permute.xlu1 %72 }
 0x12a   :  { %695 = vmatmul.mubr.msk.f32.vlgmr.msra.gmra.mrb[0].mxu0 %vm28_vm0, %v819_v1  ;;  %v78_v33 = vmul.f32 %v863_v31, %v52_v30 }
 0x12b   :  { %705 = vmatpush3.msra.mxu0 %v53_v35 }
 0x12c   :  { %v744_v34 = vpack.c.bf16 %v78_v33, %v77_v32 }
 0x12e   :  { %745 = vmatprep.subr.bf16.mxu1 %v744_v34 }
 0x12f   :  { %747 = vmatpush3.bf16.msra.mxu1 %v744_v34 }
 0x130   :  { %749 = vmatprep.subr.bf16.mxu1 %v748_v38 }
 0x132   :  { %702 = vmatmul.mubr.msk.f32.vlgmr.msra.gmra.mrb[0].mxu1 %vm28_vm0, %v833_v5 }
 0x133   :  { %751 = vmatpush3.bf16.msra.mxu1 %v748_v38 }
 0x134   :  { %753 = vmatprep.subr.bf16.mxu1 %v752_v53 }
 0x137   :  { %755 = vmatpush3.bf16.msra.mxu1 %v752_v53 }
 0x1fd   :  { %v696_v39 = vpop.f32.mrb[0].mxu0 }
 0x1fe   :  { %v242_v40 = vadd.f32 %v696_v39, %v76_v26  ;;  %v151_v41 = vpop.f32.mrb[1].mxu0 }
 0x1ff   :  { %v241_v42 = vadd.f32 %v151_v41, %v75_v25 }
 0x200   :  { %v246_v44 = vmul.f32 %v242_v40, %v851_v24 }
 0x201   :  { %v245_v43 = vmul.f32 %v241_v42, %v843_v21 }
 0x203   :  { %706 = vmatprep.mubr.msk.f32.mxu0 %vm255_vm1, %v245_v43 }
 0x204   :  { %707 = vmatmul.mubr.msk.f32.vlgmr.msra.gmra.mrb[2].mxu0 %vm255_vm1, %v246_v44 }
 0x205   :  { %v703_v45 = vpop.f32.mrb[0].mxu1 }
 0x206   :  { %v244_v46 = vadd.f32 %v703_v45, %v78_v33  ;;  %v232_v47 = vpop.f32.mrb[1].mxu1 }
 0x207   :  { %v243_v48 = vadd.f32 %v232_v47, %v77_v32 }
 0x208   :  { %v248_v50 = vmul.f32 %v244_v46, %v863_v31 }
 0x209   :  { %v247_v49 = vmul.f32 %v243_v48, %v855_v28 }
 0x20b   :  { %709 = vmatprep.mubr.msk.f32.mxu0 %vm255_vm1, %v247_v49 }
 0x20c   :  { %710 = vmatmul.mubr.msk.f32.gmra.mrb[4].mxu0 %vm255_vm1, %v248_v50 }
 0x20d   :  { %730 = vmatprep.mubr.msk.f32.mxu0 %vm28_vm0, %v814_v0 }
 0x2d7   :  { %v708_v55 = vpop.f32.mrb[2].mxu0 }
 0x2d8   :  { %v340_v56 = vadd.f32 %v708_v55, %v647_v54  ;;  %v334_v57 = vpop.f32.mrb[3].mxu0 }
 0x2d9   :  { %v335_v58 = vadd.f32 %v647_v54, %v334_v57 }
 0x2da   :  { %v354_v60 = vmax.f32 %v340_v56, 0.0 }
 0x2db   :  { %v353_v59 = vmax.f32 %v335_v58, 0.0 }
 0x2dd   :  { %720 = vmatprep.mubr.msk.f32.mxu1 %vm362_vm2, %v353_v59 }
 0x2de   :  { %721 = vmatmul.mubr.msk.f32.vlgmr.msra.gmra.mrb[2].mxu1 %vm362_vm2, %v354_v60 }
 0x2df   :  { %v711_v61 = vpop.f32.mrb[4].mxu0 }
 0x2e0   :  { %v350_v62 = vadd.f32 %v711_v61, %v647_v54  ;;  %v344_v63 = vpop.f32.mrb[5].mxu0 }
 0x2e1   :  { %v345_v0 = vadd.f32 %v647_v54, %v344_v63 }
 0x2e2   :  { %v356_v4 = vmax.f32 %v350_v62, 0.0 }
 0x2e3   :  { %v355_v3 = vmax.f32 %v345_v0, 0.0 }
 0x2e5   :  { %723 = vmatprep.mubr.msk.f32.mxu1 %vm362_vm2, %v355_v3 }
 0x2e6   :  { %724 = vmatmul.mubr.msk.f32.gmra.mrb[4].mxu1 %vm362_vm2, %v356_v4 }
 0x3b1   :  { %v722_v6 = vpop.f32.mrb[2].mxu1 }
 0x3b2   :  { %v461_v7 = vmul.f32 %v722_v6, %v851_v24  ;;  %v441_v8 = vpop.f32.mrb[3].mxu1 }
 0x3b3   :  { %v460_v9 = vmul.f32 %v441_v8, %v843_v21 }
 0x3b5   :  { %v756_v10 = vpack.c.bf16 %v461_v7, %v460_v9 }
 0x3b7   :  { %757 = vmatprep.subr.bf16.mxu0 %v756_v10 }
 0x3b8   :  { %759 = vmatpush3.bf16.msra.mxu0 %v756_v10 }
 0x3b9   :  { %v725_v11 = vpop.f32.mrb[4].mxu1 }
 0x3ba   :  { %v463_v12 = vmul.f32 %v725_v11, %v863_v31  ;;  %v451_v13 = vpop.f32.mrb[5].mxu1 }
 0x3bb   :  { %v462_v14 = vmul.f32 %v451_v13, %v855_v28  ;;  %731 = vmatmul.mubr.msk.f32.vlgmr.msra.gmra.mrb[6].mxu0 %vm28_vm0, %v819_v1 }
 0x3bc   :  { %737 = vmatprep.mubr.msk.f32.mxu0 %vm28_vm0, %v824_v2 }
 0x3bd   :  { %v760_v15 = vpack.c.bf16 %v463_v12, %v462_v14 }
 0x3bf   :  { %761 = vmatprep.subr.bf16.mxu0 %v760_v15 }
 0x3c0   :  { %763 = vmatpush3.bf16.msra.mxu0 %v760_v15 }
 0x3c3   :  { %738 = vmatmul.mubr.msk.f32.vlgmr.msra.gmra.mrb[8].mxu0 %vm28_vm0, %v833_v5 }
 0x48e   :  { %v732_v16 = vpop.f32.mrb[6].mxu0 }
 0x48f   :  { %v615_v17 = vadd.f32 %v732_v16, %v461_v7  ;;  %v530_v18 = vpop.f32.mrb[7].mxu0 }
 0x490   :  { %v614_v20 = vadd.f32 %v530_v18, %v460_v9 }
 0x491   :  { %v619_v22 = vmul.f32 %v615_v17, %v851_v24 }
 0x492   :  { %v618_v1 = vmul.f32 %v614_v20, %v843_v21 }
 0x493   :  { %v629_v2 = vadd.f32 %v660_v19, %v619_v22 }
 0x494   :  { %v628_v23 = vadd.f32 %v660_v19, %v618_v1 }
 0x495   :  { %634 = vst.msk [vmem:[%s930_s6 + $0x8] sm:$0xff] %vm632_vm3, %v629_v2 }
 0x496   :  { %633 = vst.msk [vmem:[%s930_s6] sm:$0xff] %vm632_vm3, %v628_v23  ;;  %v739_v5 = vpop.f32.mrb[8].mxu0 }
 0x497   :  { %v617_v25 = vadd.f32 %v739_v5, %v463_v12  ;;  %v605_v26 = vpop.f32.mrb[9].mxu0 }
 0x498   :  { %v616_v27 = vadd.f32 %v605_v26, %v462_v14 }
 0x499   :  { %v621_v29 = vmul.f32 %v617_v25, %v863_v31 }
 0x49a   :  { %v620_v24 = vmul.f32 %v616_v27, %v855_v28 }
 0x49b   :  { %v631_v30 = vadd.f32 %v660_v19, %v621_v29 }
 0x49c   :  { %v630_v21 = vadd.f32 %v660_v19, %v620_v24 }
 0x49d   :  { %636 = vst.msk [vmem:[%s930_s6 + $0x18] sm:$0xff] %vm632_vm3, %v631_v30 }
 0x49e   :  { %635 = vst.msk [vmem:[%s930_s6 + $0x10] sm:$0xff] %vm632_vm3, %v630_v21 }

</bundles_post_ra>
